<compile_context>
chip_gen: v7x
topology: tpu7x:2x2x1
jax: 0.10.0
libtpu: 0.0.40
codegen_flags: <defaults>
</compile_context>

<pallas_src>
import math

import jax
import jax.numpy as jnp
from jax import lax
from jax.experimental import pallas as pl
from jax.experimental.pallas import tpu as pltpu


def _cdiv(a, b):
    return -(-a // b)


def _round_up(a, b):
    return _cdiv(a, b) * b


def _num_tensorcores():
    """2 TensorCores only on v7x; v5e/v6e have a single TC per device."""
    try:
        kind = jax.devices()[0].device_kind.lower()
    except Exception:
        return 1
    return 2 if ("v7" in kind or "tpu7" in kind) else 1


def _make_sumsq_kernel(*, steps, block_rows, acc_rows, lane, n_rows):
    n_full_blocks = n_rows // block_rows            # blocks with no ragged tail
    rem_rows = n_rows - n_full_blocks * block_rows  # valid rows in the edge block
    groups = block_rows // acc_rows

    def kernel(x_ref, out_ref, acc_ref):
        i = pl.program_id(1)

        @pl.when(i == 0)
        def _():
            acc_ref[...] = jnp.zeros_like(acc_ref)

        blk = pl.program_id(0) * steps + i          # logical (unclamped) block id

        def accumulate(x):
            # Small-accumulator update: pure-VPU tree add into (acc_rows, lane),
            # i.e. ~no vector-store pressure on the hot path.
            xsq = x * x
            acc_ref[...] += jnp.sum(xsq.reshape(groups, acc_rows, lane), axis=0)

        if n_full_blocks > 0:
            @pl.when(blk < n_full_blocks)
            def _():
                accumulate(x_ref[...].astype(jnp.float32))

        if rem_rows > 0:
            @pl.when(blk == n_full_blocks)
            def _():
                # Edge block: rows >= rem_rows hold undefined data (Pallas does
                # not zero-fill partial blocks) -> mask BEFORE squaring.
                x = x_ref[...].astype(jnp.float32)
                row = lax.broadcasted_iota(jnp.int32, (block_rows, 1), 0)
                x = jnp.where(row < rem_rows, x, 0.0)
                accumulate(x)

        # Blocks with blk > last valid block (core-split overshoot) do nothing.

        @pl.when(i == steps - 1)
        def _():
            total = jnp.sum(acc_ref[...])           # single XLU reduce per core
            out_ref[...] = jnp.full(out_ref.shape, total, dtype=jnp.float32)

    return kernel


def waveflow_loss(out, logdet, sigma=1.0, *, lane_width=512, max_block_rows=2048,
                  target_steps=16):
    """Pallas implementation of WaveFlowLossDataParallel.forward.

    out    : (B, h, C, T) float array
    logdet : any-shape float array (summed)
    returns: scalar float32 loss
    """
    B, h, C, T = out.shape
    n_elems = B * h * C * T
    itemsize = jnp.dtype(out.dtype).itemsize
    num_cores = _num_tensorcores()

    flat = out.reshape(-1)                          # free (bitcast) reshape

    # Pick a lane width that divides n_elems so the 2-D reshape below is also a
    # free bitcast (no jnp.pad => no extra full-tensor HBM read+write).
    lane = None
    for cand in (lane_width, 512, 256, 128):
        if cand % 128 == 0 and n_elems % cand == 0:
            lane = cand
            break
    if lane is None:
        # Rare fallback (n_elems not a multiple of 128): pad once; zeros add 0.
        lane = lane_width
        flat = jnp.pad(flat, (0, (-n_elems) % lane))
    n_rows = flat.shape[0] // lane
    slab = flat.reshape(n_rows, lane)               # free (bitcast) reshape

    # Block sizing: 32-row aligned (covers f32/bf16/int8 sublane packing and the
    # 32-row accumulator), ~target_steps steps per core, capped at max_block_rows
    # (2048 rows x 512 lanes x 4 B = 4 MiB; double-buffered = 8 MiB VMEM).
    ACC_ROWS = 32
    if n_rows <= ACC_ROWS:
        block_rows = n_rows                         # single full-dim block
        acc_rows = n_rows
    else:
        br = _round_up(_cdiv(n_rows, num_cores * target_steps), ACC_ROWS)
        br = min(br, max_block_rows, (n_rows // ACC_ROWS) * ACC_ROWS)
        block_rows = max(br, ACC_ROWS)
        acc_rows = ACC_ROWS

    n_blocks = _cdiv(n_rows, block_rows)
    steps = _cdiv(n_blocks, num_cores)
    grid = (num_cores, steps)

    kernel = _make_sumsq_kernel(steps=steps, block_rows=block_rows,
                                acc_rows=acc_rows, lane=lane, n_rows=n_rows)

    def in_map(c, i, _s=steps, _nb=n_blocks):
        # Clamp overshoot blocks from the core split so the DMA never runs past
        # the array; the kernel skips them using the unclamped logical index.
        return (jnp.minimum(c * _s + i, _nb - 1), 0)

    partials = pl.pallas_call(
        kernel,
        out_shape=jax.ShapeDtypeStruct((num_cores, 8, 128), jnp.float32),
        grid_spec=pltpu.PrefetchScalarGridSpec(
            num_scalar_prefetch=0,
            grid=grid,
            in_specs=[pl.BlockSpec((block_rows, lane), in_map)],
            out_specs=pl.BlockSpec((1, 8, 128), lambda c, i: (c, 0, 0)),
            scratch_shapes=[pltpu.VMEM((acc_rows, lane), jnp.float32)],
        ),
        compiler_params=pltpu.CompilerParams(
            # "parallel" shards the core axis across TensorCores on v7x; it is a
            # trivial size-1 loop on v5e/v6e (num_cores=1 there).
            # TODO(synk): on v7x, try pltpu.CORE_PARALLEL for axis 0 if a profile
            # shows the second TensorCore idle under "parallel".
            dimension_semantics=("parallel", "arbitrary"),
        ),
        cost_estimate=pl.CostEstimate(
            flops=2 * n_elems,
            transcendentals=0,
            bytes_accessed=n_elems * itemsize + num_cores * 8 * 128 * 4,
        ),
    )(slab)

    sumsq = jnp.sum(partials[:, 0, 0])

    # Cheap scalar tail outside the kernel.
    sigma = float(sigma)
    logdet_sum = jnp.sum(logdet).astype(jnp.float32)
    const = 0.5 * (math.log(2.0 * math.pi) + 2.0 * math.log(sigma)) * float(n_elems)
    loss = 0.5 * sumsq / (sigma * sigma) + const - logdet_sum
    return loss / float(B * C * T)


def waveflow_loss_ref(out, logdet, sigma=1.0):
    """Pure-JAX reference matching the PyTorch module exactly."""
    B, h, C, T = out.shape
    logdet_sum = jnp.sum(logdet).astype(jnp.float32)
    loss = 0.5 * jnp.sum(
        math.log(2.0 * math.pi)
        + 2.0 * math.log(sigma)
        + out.astype(jnp.float32) ** 2 / (sigma * sigma)
    ) - logdet_sum
    return loss / (B * C * T)


if __name__ == "__main__":
    # Small shapes consistent with the module's (B, h, C, T) convention.
    B, h, C, T = 2, 4, 8, 16

    key = jax.random.PRNGKey(0)
    k1, k2 = jax.random.split(key)
    out = jax.random.normal(k1, (B, h, C, T), dtype=jnp.float32)
    logdet = jax.random.normal(k2, (B,), dtype=jnp.float32)  # per-batch logdet terms

    loss = jax.jit(waveflow_loss)(out, logdet)
    loss = jax.block_until_ready(loss)

    ref = waveflow_loss_ref(out, logdet, 1.0)
    assert jnp.allclose(loss, ref, rtol=1e-5, atol=1e-5), (loss, ref)

    print("KERNEL_OK")
</pallas_src>

<mosaic_0001>
module attributes {stable_mosaic.version = 11 : i64} {
  func.func @kernel(%arg0: i32, %arg1: i32, %arg2: memref<2x512xf32, #tpu.memory_space<vmem>>, %arg3: memref<1x8x128xf32, #tpu.memory_space<vmem>>, %arg4: memref<2x512xf32, #tpu.memory_space<vmem>>) attributes {dimension_semantics = [#tpu.dimension_semantics<parallel>, #tpu.dimension_semantics<arbitrary>], iteration_bounds = array<i64: 1, 1>, scalar_prefetch = 0 : i64, scratch_operands = 1 : i64, tpu.core_type = #tpu.core_type<tc>, window_params = [{transform_indices = @transform_0, window_bounds = array<i64: 2, 512>}, {transform_indices = @transform_1, window_bounds = array<i64: 1, 8, 128>}]} {
    %c0_i32 = arith.constant 0 : i32
    %0 = arith.cmpi eq, %arg1, %c0_i32 : i32
    %1 = arith.extui %0 : i1 to i32
    %c0_i32_0 = arith.constant 0 : i32
    %2 = arith.cmpi ne, %1, %c0_i32_0 : i32
    scf.if %2 {
      %cst = arith.constant 0.000000e+00 : f32
      %11 = vector.broadcast %cst : f32 to vector<2x512xf32>
      %c0 = arith.constant 0 : index
      %c0_5 = arith.constant 0 : index
      %12 = vector.load %arg4[%c0, %c0_5] : memref<2x512xf32, #tpu.memory_space<vmem>>, vector<2x512xf32>
      tpu.vector_store %arg4[%c0, %c0_5], %11 {strides = array<i32>} : memref<2x512xf32, #tpu.memory_space<vmem>>, vector<2x512xf32>,
    } else {
    }
    %c1_i32 = arith.constant 1 : i32
    %3 = arith.muli %arg0, %c1_i32 : i32
    %4 = arith.addi %3, %arg1 : i32
    %c1_i32_1 = arith.constant 1 : i32
    %5 = arith.cmpi slt, %4, %c1_i32_1 : i32
    %6 = arith.extui %5 : i1 to i32
    %c0_i32_2 = arith.constant 0 : i32
    %7 = arith.cmpi ne, %6, %c0_i32_2 : i32
    scf.if %7 {
      %c0 = arith.constant 0 : index
      %c0_5 = arith.constant 0 : index
      %11 = vector.load %arg2[%c0, %c0_5] : memref<2x512xf32, #tpu.memory_space<vmem>>, vector<2x512xf32>
      %12 = arith.mulf %11, %11 : vector<2x512xf32>
      %c0_6 = arith.constant 0 : index
      %c0_7 = arith.constant 0 : index
      %13 = vector.load %arg4[%c0_6, %c0_7] : memref<2x512xf32, #tpu.memory_space<vmem>>, vector<2x512xf32>
      %14 = vector.shape_cast %12 : vector<2x512xf32> to vector<1x2x512xf32>
      %cst = arith.constant dense<0.000000e+00> : vector<2x512xf32>
      %15 = vector.multi_reduction <add>, %14, %cst [0] : vector<1x2x512xf32> to vector<2x512xf32>
      %16 = arith.addf %13, %15 : vector<2x512xf32>
      %c0_8 = arith.constant 0 : index
      %c0_9 = arith.constant 0 : index
      %17 = vector.load %arg4[%c0_8, %c0_9] : memref<2x512xf32, #tpu.memory_space<vmem>>, vector<2x512xf32>
      tpu.vector_store %arg4[%c0_8, %c0_9], %16 {strides = array<i32>} : memref<2x512xf32, #tpu.memory_space<vmem>>, vector<2x512xf32>,
    } else {
    }
    %c0_i32_3 = arith.constant 0 : i32
    %8 = arith.cmpi eq, %arg1, %c0_i32_3 : i32
    %9 = arith.extui %8 : i1 to i32
    %c0_i32_4 = arith.constant 0 : i32
    %10 = arith.cmpi ne, %9, %c0_i32_4 : i32
    scf.if %10 {
      %c0 = arith.constant 0 : index
      %c0_5 = arith.constant 0 : index
      %11 = vector.load %arg4[%c0, %c0_5] : memref<2x512xf32, #tpu.memory_space<vmem>>, vector<2x512xf32>
      %12 = vector.shape_cast %11 : vector<2x512xf32> to vector<1x2x512xf32>
      %cst = arith.constant dense<0.000000e+00> : vector<1xf32>
      %13 = vector.multi_reduction <add>, %12, %cst [1, 2] : vector<1x2x512xf32> to vector<1xf32>
      %14 = vector.shape_cast %13 : vector<1xf32> to vector<1x1x1xf32>
      %15 = vector.extract %14[0, 0, 0] : f32 from vector<1x1x1xf32>
      %16 = vector.broadcast %15 : f32 to vector<1x8x128xf32>
      %c0_6 = arith.constant 0 : index
      %c0_7 = arith.constant 0 : index
      %c0_8 = arith.constant 0 : index
      %17 = vector.load %arg3[%c0_6, %c0_7, %c0_8] : memref<1x8x128xf32, #tpu.memory_space<vmem>>, vector<1x8x128xf32>
      tpu.vector_store %arg3[%c0_6, %c0_7, %c0_8], %16 {strides = array<i32>} : memref<1x8x128xf32, #tpu.memory_space<vmem>>, vector<1x8x128xf32>,
    } else {
    }
    return
  }
  func.func @transform_0(%arg0: i32, %arg1: i32) -> (i32, i32) {
    %c1_i32 = arith.constant 1 : i32
    %0 = arith.muli %arg0, %c1_i32 : i32
    %1 = arith.addi %0, %arg1 : i32
    %c0_i32 = arith.constant 0 : i32
    %2 = arith.minsi %1, %c0_i32 : i32
    %c0_i32_0 = arith.constant 0 : i32
    %c0_i32_1 = arith.constant 0 : i32
    return %2, %c0_i32_0 : i32, i32
  }
  func.func @transform_1(%arg0: i32, %arg1: i32) -> (i32, i32, i32) {
    %c0_i32 = arith.constant 0 : i32
    %c0_i32_0 = arith.constant 0 : i32
    %c0_i32_1 = arith.constant 0 : i32
    return %arg0, %c0_i32, %c0_i32_0 : i32, i32, i32
  }
}

</mosaic_0001>

<bundles_post_ra>
// kernel: waveflow_loss.1
= control target key start
LH: loop header
LB: loop body
LE: loop exit
PB: predicated region body
PF: predicated region fallthrough
CT: control target
= control target key end

     0   :  { %v63_v0 = vlaneseq  ;;  %v112_v2 = vmov 1983009808   ;;  %vm80_vm0 = vcmask 1041408   ;;  %s129_s0 = inlined_call_operand.vmem [shape: f32[2,512], index: 0, kind: input, shape index: {}]   ;;  %s130_s1 = inlined_call_operand.vmem [shape: f32[1,8,128], index: 1, kind: output, shape index: {}]  }
   0x1   :  { %v48_v1 = vld [vmem:[%s129_s0] sm:$0xff]  ;;  %v61_v3 = vunpack.c.l.s4 %v112_v2 }
   0x2   :  { %v49_v4 = vmul.f32 %v48_v1, %v48_v1  ;;  %v64_v5 = vshrl.u32 %v63_v0, 7 }
   0x3   :  { %v62_v6 = vunpack.c.0.s8 %v61_v3 }
   0x4   :  { %v59_v7 = vcombine.high %v49_v4, %v49_v4 }
   0x5   :  { %v65_v8 = vsub.s32 %v62_v6, %v64_v5 }
   0x7   :  { %v66_v9 = vrot.slane %v49_v4, %v65_v8  ;;  %v73_v10 = vrot.slane %v59_v7, %v65_v8 }
   0x9   :  { %v74_v11 = vcombine.high %v66_v9, %v66_v9  ;;  %v75_v12 = vcombine.high %v73_v10, %v73_v10  ;;  %v81_v13 = vsel %vm80_vm0, %v66_v9, 0.0  ;;  %v84_v15 = vsel %vm80_vm0, %v73_v10, 0.0 }
   0xb   :  { %v82_v14 = vsel %vm80_vm0, %v74_v11, 0.0  ;;  %v86_v17 = vsel %vm80_vm0, %v75_v12, 0.0 }
   0xc   :  { %v83_v16 = vadd.f32 %v82_v14, %v81_v13 }
   0xe   :  { %v85_v18 = vadd.f32 %v84_v15, %v83_v16 }
  0x10   :  { %v87_v19 = vadd.f32 %v86_v17, %v85_v18 }
  0x12   :  { %88 = vadd.xlane.f32.xlu0 %v87_v19 }
  0x9f   :  { %v89_v20 = vpop.xlane.xlu0 %88 }
  0xa0   :  { %v90_v21 = vrot.slane %v89_v20, 4 }
  0xa2   :  { %v91_v22 = vadd.f32 %v90_v21, %v89_v20 }
  0xa4   :  { %v92_v23 = vrot.slane %v91_v22, 2 }
  0xa6   :  { %v93_v24 = vadd.f32 %v92_v23, %v91_v22 }
  0xa8   :  { %v94_v25 = vrot.slane %v93_v24, 1 }
  0xaa   :  { %v95_v26 = vadd.f32 %v94_v25, %v93_v24 }
  0xac   :  { %109 = vpush %v95_v26 }
  0xdd   :  { %s110_s0 = spop %109 }
  0xde   :  { %v97_v27 = vstv %s110_s0 }
  0xdf   :  { %98 = vst [vmem:[%s130_s1] sm:$0xff] %v97_v27 }

</bundles_post_ra>
